<compile_context>
chip_gen: v6e
topology: v6e:2x2x1
jax: 0.10.0
libtpu: 0.0.40
codegen_flags: <defaults>
</compile_context>

<pallas_src>
import functools

import jax
import jax.numpy as jnp
from jax.experimental import pallas as pl
from jax.experimental.pallas import tpu as pltpu

PAD = 128     # lane-pad every feature dimension to one full vreg lane width
HIDDEN = 24


def qnet_kernel(x_ref, p_ref, o_ref):
    # Packed parameter slab layout (rows of a (392, 128) f32 array):
    #   [  0,128)  W1  (rows 0..input_dim-1 used, 24 cols used)
    #   [128,256)  W2  (rows 0..23 used,          24 cols used)
    #   [256,384)  W3  (rows 0..23 used,          out_dim cols used)
    #   row 384 = b1, row 385 = b2, row 386 = b3, rows 387..391 = zero pad
    x = x_ref[...]                                   # (TB, 128) lane-dense
    w1 = p_ref[0:128, :]
    w2 = p_ref[128:256, :]
    w3 = p_ref[256:384, :]
    b1 = p_ref[384:385, :]
    b2 = p_ref[385:386, :]
    b3 = p_ref[386:387, :]

    h1 = jnp.dot(x, w1, preferred_element_type=jnp.float32) + b1
    h1 = jnp.maximum(h1, 0.0)                        # ReLU (padded cols stay 0)
    h2 = jnp.dot(h1, w2, preferred_element_type=jnp.float32) + b2
    h2 = jnp.maximum(h2, 0.0)
    out = jnp.dot(h2, w3, preferred_element_type=jnp.float32) + b3
    o_ref[...] = out.astype(o_ref.dtype)             # lane-dense (TB, 128) store


def pack_params(params, input_dim, output_dim, hidden=HIDDEN):
    """Pack w1,b1,w2,b2,w3,b3 into one zero-padded (392, 128) slab."""
    w1 = jnp.zeros((PAD, PAD), jnp.float32).at[:input_dim, :hidden].set(params["w1"])
    w2 = jnp.zeros((PAD, PAD), jnp.float32).at[:hidden, :hidden].set(params["w2"])
    w3 = jnp.zeros((PAD, PAD), jnp.float32).at[:hidden, :output_dim].set(params["w3"])
    b = jnp.zeros((8, PAD), jnp.float32)
    b = b.at[0, :hidden].set(params["b1"].reshape(-1))
    b = b.at[1, :hidden].set(params["b2"].reshape(-1))
    b = b.at[2, :output_dim].set(params["b3"].reshape(-1))
    return jnp.concatenate([w1, w2, w3, b], axis=0)   # (392, 128)


def _round_up(n, m):
    return ((n + m - 1) // m) * m


@functools.partial(jax.jit, static_argnames=("input_dim", "output_dim"))
def q_network_forward(x, params, *, input_dim, output_dim):
    """x: (B, input_dim) float32; params: dict of w1,b1,w2,b2,w3,b3."""
    B = x.shape[0]
    slab = pack_params(params, input_dim, output_dim)

    # Batch tile: >= 8 sublanes; 512-row tiles for big batches keep
    # (x + out) double-buffers ~1 MiB -> safe on v7x's 64 MiB VMEM while
    # still amortizing per-grid-step overhead on v5e/v6e.
    TB = 512 if B > 512 else _round_up(max(B, 8), 8)
    B_pad = _round_up(max(B, 8), TB)

    # Explicit (8,128)-grain padding: unmasked vld/vst, no mask-gen VALU work.
    xp = jnp.zeros((B_pad, PAD), jnp.float32).at[:B, :input_dim].set(x)

    out = pl.pallas_call(
        qnet_kernel,
        out_shape=jax.ShapeDtypeStruct((B_pad, PAD), jnp.float32),
        grid=(B_pad // TB,),
        in_specs=[
            pl.BlockSpec((TB, PAD), lambda i: (i, 0)),       # batch-tiled input
            pl.BlockSpec(slab.shape, lambda i: (0, 0)),      # single resident slab
        ],
        out_specs=pl.BlockSpec((TB, PAD), lambda i: (i, 0)),
        compiler_params=pltpu.CompilerParams(
            dimension_semantics=("parallel",)),
    )(xp, slab)
    return out[:B, :output_dim]


def init_params(key, input_dim, output_dim, hidden=HIDDEN):
    """Mirror the PyTorch module's init. Weights stored as (in, out)."""
    k1, k2, k3, k4, k5, k6 = jax.random.split(key, 6)
    bnd1 = 1.0 / jnp.sqrt(input_dim)
    bnd2 = 1.0 / jnp.sqrt(hidden)
    return {
        "w1": jax.random.uniform(k1, (input_dim, hidden), jnp.float32, -bnd1, bnd1),
        "b1": jax.random.uniform(k2, (1, hidden), jnp.float32, -bnd1, bnd1),
        "w2": jax.random.uniform(k3, (hidden, hidden), jnp.float32, -bnd2, bnd2),
        "b2": jax.random.uniform(k4, (1, hidden), jnp.float32, -bnd2, bnd2),
        "w3": jax.random.uniform(k5, (hidden, output_dim), jnp.float32, -0.001, 0.001),
        "b3": jax.random.uniform(k6, (1, output_dim), jnp.float32, -0.001, 0.001),
    }


def reference_forward(x, p):
    h1 = jnp.maximum(x @ p["w1"] + p["b1"], 0.0)
    h2 = jnp.maximum(h1 @ p["w2"] + p["b2"], 0.0)
    return h2 @ p["w3"] + p["b3"]


if __name__ == "__main__":
    key = jax.random.PRNGKey(0)
    kx, kp = jax.random.split(key)

    batch, input_dim, output_dim = 2, 4, 2   # CartPole: 4 observations -> 2 actions
    x = jax.random.normal(kx, (batch, input_dim), jnp.float32)
    params = init_params(kp, input_dim, output_dim)

    out = q_network_forward(x, params, input_dim=input_dim, output_dim=output_dim)
    out = jax.block_until_ready(out)

    ref = reference_forward(x, params)
    assert out.shape == (batch, output_dim)
    assert jnp.allclose(out, ref, atol=1e-5, rtol=1e-5)

    print("KERNEL_OK")
</pallas_src>

<mosaic_0001>
module attributes {stable_mosaic.version = 11 : i64} {
  func.func @qnet_kernel(%arg0: i32, %arg1: memref<8x128xf32, #tpu.memory_space<vmem>>, %arg2: memref<392x128xf32, #tpu.memory_space<vmem>>, %arg3: memref<8x128xf32, #tpu.memory_space<vmem>>) attributes {dimension_semantics = [#tpu.dimension_semantics<parallel>], iteration_bounds = array<i64: 1>, scalar_prefetch = 0 : i64, scratch_operands = 0 : i64, tpu.core_type = #tpu.core_type<tc>, window_params = [{transform_indices = @transform_0, window_bounds = array<i64: 8, 128>}, {pipeline_mode = #tpu.pipeline_mode<synchronous>, transform_indices = @transform_1, window_bounds = array<i64: 392, 128>}, {transform_indices = @transform_2, window_bounds = array<i64: 8, 128>}]} {
    %c0 = arith.constant 0 : index
    %c0_0 = arith.constant 0 : index
    %0 = vector.load %arg1[%c0, %c0_0] : memref<8x128xf32, #tpu.memory_space<vmem>>, vector<8x128xf32>
    %c0_1 = arith.constant 0 : index
    %c0_2 = arith.constant 0 : index
    %1 = vector.load %arg2[%c0_1, %c0_2] : memref<392x128xf32, #tpu.memory_space<vmem>>, vector<128x128xf32>
    %c128 = arith.constant 128 : index
    %c0_3 = arith.constant 0 : index
    %2 = vector.load %arg2[%c128, %c0_3] : memref<392x128xf32, #tpu.memory_space<vmem>>, vector<128x128xf32>
    %c256 = arith.constant 256 : index
    %c0_4 = arith.constant 0 : index
    %3 = vector.load %arg2[%c256, %c0_4] : memref<392x128xf32, #tpu.memory_space<vmem>>, vector<128x128xf32>
    %c384 = arith.constant 384 : index
    %c0_5 = arith.constant 0 : index
    %4 = vector.load %arg2[%c384, %c0_5] : memref<392x128xf32, #tpu.memory_space<vmem>>, vector<1x128xf32>
    %c385 = arith.constant 385 : index
    %c0_6 = arith.constant 0 : index
    %5 = vector.load %arg2[%c385, %c0_6] : memref<392x128xf32, #tpu.memory_space<vmem>>, vector<1x128xf32>
    %c386 = arith.constant 386 : index
    %c0_7 = arith.constant 0 : index
    %6 = vector.load %arg2[%c386, %c0_7] : memref<392x128xf32, #tpu.memory_space<vmem>>, vector<1x128xf32>
    %cst = arith.constant dense<0.000000e+00> : vector<8x128xf32>
    %7 = tpu.matmul %0, %1, %cst {dimension_numbers = #tpu.dot_dimension_numbers<[1], [0], [0], [1], [0, 0, 1, 1], [], []>} : vector<8x128xf32>, vector<128x128xf32>, vector<8x128xf32> -> vector<8x128xf32>
    %8 = vector.broadcast %4 : vector<1x128xf32> to vector<8x128xf32>
    %9 = arith.addf %7, %8 : vector<8x128xf32>
    %cst_8 = arith.constant 0.000000e+00 : f32
    %10 = vector.broadcast %cst_8 : f32 to vector<8x128xf32>
    %11 = arith.maximumf %9, %10 : vector<8x128xf32>
    %cst_9 = arith.constant dense<0.000000e+00> : vector<8x128xf32>
    %12 = tpu.matmul %11, %2, %cst_9 {dimension_numbers = #tpu.dot_dimension_numbers<[1], [0], [0], [1], [0, 0, 1, 1], [], []>} : vector<8x128xf32>, vector<128x128xf32>, vector<8x128xf32> -> vector<8x128xf32>
    %13 = vector.broadcast %5 : vector<1x128xf32> to vector<8x128xf32>
    %14 = arith.addf %12, %13 : vector<8x128xf32>
    %cst_10 = arith.constant 0.000000e+00 : f32
    %15 = vector.broadcast %cst_10 : f32 to vector<8x128xf32>
    %16 = arith.maximumf %14, %15 : vector<8x128xf32>
    %cst_11 = arith.constant dense<0.000000e+00> : vector<8x128xf32>
    %17 = tpu.matmul %16, %3, %cst_11 {dimension_numbers = #tpu.dot_dimension_numbers<[1], [0], [0], [1], [0, 0, 1, 1], [], []>} : vector<8x128xf32>, vector<128x128xf32>, vector<8x128xf32> -> vector<8x128xf32>
    %18 = vector.broadcast %6 : vector<1x128xf32> to vector<8x128xf32>
    %19 = arith.addf %17, %18 : vector<8x128xf32>
    %c0_12 = arith.constant 0 : index
    %c0_13 = arith.constant 0 : index
    %20 = vector.load %arg3[%c0_12, %c0_13] : memref<8x128xf32, #tpu.memory_space<vmem>>, vector<8x128xf32>
    tpu.vector_store %arg3[%c0_12, %c0_13], %19 {strides = array<i32>} : memref<8x128xf32, #tpu.memory_space<vmem>>, vector<8x128xf32>,
    return
  }
  func.func @transform_0(%arg0: i32) -> (i32, i32) {
    %c0_i32 = arith.constant 0 : i32
    %c0_i32_0 = arith.constant 0 : i32
    return %arg0, %c0_i32 : i32, i32
  }
  func.func @transform_1(%arg0: i32) -> (i32, i32) {
    %c0_i32 = arith.constant 0 : i32
    %c0_i32_0 = arith.constant 0 : i32
    %c0_i32_1 = arith.constant 0 : i32
    return %c0_i32, %c0_i32_0 : i32, i32
  }
  func.func @transform_2(%arg0: i32) -> (i32, i32) {
    %c0_i32 = arith.constant 0 : i32
    %c0_i32_0 = arith.constant 0 : i32
    return %arg0, %c0_i32 : i32, i32
  }
}

</mosaic_0001>

<bundles_post_ra>
// kernel: q_network_forward.1
= control target key start
LH: loop header
LB: loop body
LE: loop exit
PB: predicated region body
PF: predicated region fallthrough
CT: control target
= control target key end

     0   :  { %v453_v0 = vmov 0.0   ;;  %vm454_vm0 = vmmov 0   ;;  %s683_s1 = inlined_call_operand.vmem [shape: f32[392,128], index: 1, kind: input, shape index: {}]   ;;  %s684_s0 = inlined_call_operand.vmem [shape: f32[8,128], index: 0, kind: input, shape index: {}]   ;;  %s685_s2 = inlined_call_operand.vmem [shape: f32[8,128], index: 2, kind: output, shape index: {}]  }
   0x1   :  { %346 = vmatprep.subr.mxu0 %v453_v0  ;;  %v27_v1 = vld [vmem:[%s683_s1 + $0x78] sm:$0xff]  ;;  %v26_v2 = vld [vmem:[%s683_s1 + $0x70] sm:$0xff]  ;;  %378 = vmatprep.mubr.msk.f32.mxu0 %vm454_vm0, %v453_v0  ;;  %v25_v3 = vld [vmem:[%s683_s1 + $0x68] sm:$0xff] }
   0x2   :  { %347 = vmatpush3.msra.mxu0 %v27_v1  ;;  %381 = vmatprep.subr.mxu1 %v453_v0  ;;  %v24_v4 = vld [vmem:[%s683_s1 + $0x60] sm:$0xff]  ;;  %v43_v5 = vld [vmem:[%s683_s1 + $0xf8] sm:$0xff]  ;;  %v42_v7 = vld [vmem:[%s683_s1 + $0xf0] sm:$0xff] }
   0x3   :  { %348 = vmatprep.subr.mxu0 %v453_v0  ;;  %413 = vmatprep.mubr.msk.f32.mxu1 %vm454_vm0, %v453_v0  ;;  %v23_v6 = vld [vmem:[%s683_s1 + $0x58] sm:$0xff]  ;;  %v41_v8 = vld [vmem:[%s683_s1 + $0xe8] sm:$0xff]  ;;  %v22_v9 = vld [vmem:[%s683_s1 + $0x50] sm:$0xff] }
   0x4   :  { %349 = vmatpush3.msra.mxu0 %v26_v2  ;;  %382 = vmatpush3.msra.mxu1 %v43_v5  ;;  %v40_v10 = vld [vmem:[%s683_s1 + $0xe0] sm:$0xff]  ;;  %v21_v11 = vld [vmem:[%s683_s1 + $0x48] sm:$0xff]  ;;  %v39_v12 = vld [vmem:[%s683_s1 + $0xd8] sm:$0xff] }
   0x5   :  { %350 = vmatprep.subr.mxu0 %v453_v0  ;;  %383 = vmatprep.subr.mxu1 %v453_v0  ;;  %v20_v13 = vld [vmem:[%s683_s1 + $0x40] sm:$0xff]  ;;  %v38_v14 = vld [vmem:[%s683_s1 + $0xd0] sm:$0xff]  ;;  %v19_v15 = vld [vmem:[%s683_s1 + $0x38] sm:$0xff] }
   0x6   :  { %351 = vmatpush3.msra.mxu0 %v25_v3  ;;  %384 = vmatpush3.msra.mxu1 %v42_v7  ;;  %v37_v16 = vld [vmem:[%s683_s1 + $0xc8] sm:$0xff]  ;;  %v18_v17 = vld [vmem:[%s683_s1 + $0x30] sm:$0xff]  ;;  %v36_v18 = vld [vmem:[%s683_s1 + $0xc0] sm:$0xff] }
   0x7   :  { %352 = vmatprep.subr.mxu0 %v453_v0  ;;  %385 = vmatprep.subr.mxu1 %v453_v0  ;;  %v17_v19 = vld [vmem:[%s683_s1 + $0x28] sm:$0xff]  ;;  %v35_v20 = vld [vmem:[%s683_s1 + $0xb8] sm:$0xff]  ;;  %v16_v21 = vld [vmem:[%s683_s1 + $0x20] sm:$0xff] }
   0x8   :  { %353 = vmatpush3.msra.mxu0 %v24_v4  ;;  %386 = vmatpush3.msra.mxu1 %v41_v8  ;;  %v34_v22 = vld [vmem:[%s683_s1 + $0xb0] sm:$0xff]  ;;  %v15_v23 = vld [vmem:[%s683_s1 + $0x18] sm:$0xff]  ;;  %v33_v24 = vld [vmem:[%s683_s1 + $0xa8] sm:$0xff] }
   0x9   :  { %354 = vmatprep.subr.mxu0 %v453_v0  ;;  %387 = vmatprep.subr.mxu1 %v453_v0  ;;  %v14_v25 = vld [vmem:[%s683_s1 + $0x10] sm:$0xff]  ;;  %v32_v26 = vld [vmem:[%s683_s1 + $0xa0] sm:$0xff]  ;;  %v13_v27 = vld [vmem:[%s683_s1 + $0x8] sm:$0xff] }
   0xa   :  { %355 = vmatpush3.msra.mxu0 %v23_v6  ;;  %388 = vmatpush3.msra.mxu1 %v40_v10  ;;  %v31_v28 = vld [vmem:[%s683_s1 + $0x98] sm:$0xff]  ;;  %v12_v29 = vld [vmem:[%s683_s1] sm:$0xff]  ;;  %v30_v31 = vld [vmem:[%s683_s1 + $0x90] sm:$0xff] }
   0xb   :  { %356 = vmatprep.subr.mxu0 %v453_v0  ;;  %389 = vmatprep.subr.mxu1 %v453_v0  ;;  %v11_v30 = vld [vmem:[%s684_s0] sm:$0xff]  ;;  %v29_v32 = vld [vmem:[%s683_s1 + $0x88] sm:$0xff]  ;;  %v59_v34 = vld [vmem:[%s683_s1 + $0x178] sm:$0xff] }
   0xc   :  { %357 = vmatpush3.msra.mxu0 %v22_v9  ;;  %390 = vmatpush3.msra.mxu1 %v39_v12  ;;  %v28_v33 = vld [vmem:[%s683_s1 + $0x80] sm:$0xff]  ;;  %v58_v35 = vld [vmem:[%s683_s1 + $0x170] sm:$0xff]  ;;  %v57_v36 = vld [vmem:[%s683_s1 + $0x168] sm:$0xff] }
   0xd   :  { %358 = vmatprep.subr.mxu0 %v453_v0  ;;  %391 = vmatprep.subr.mxu1 %v453_v0  ;;  %v56_v37 = vld [vmem:[%s683_s1 + $0x160] sm:$0xff]  ;;  %v55_v38 = vld [vmem:[%s683_s1 + $0x158] sm:$0xff]  ;;  %v54_v39 = vld [vmem:[%s683_s1 + $0x150] sm:$0xff] }
   0xe   :  { %359 = vmatpush3.msra.mxu0 %v21_v11  ;;  %392 = vmatpush3.msra.mxu1 %v38_v14  ;;  %v53_v40 = vld [vmem:[%s683_s1 + $0x148] sm:$0xff]  ;;  %v52_v41 = vld [vmem:[%s683_s1 + $0x140] sm:$0xff]  ;;  %v51_v42 = vld [vmem:[%s683_s1 + $0x138] sm:$0xff] }
   0xf   :  { %360 = vmatprep.subr.mxu0 %v453_v0  ;;  %393 = vmatprep.subr.mxu1 %v453_v0  ;;  %v50_v43 = vld [vmem:[%s683_s1 + $0x130] sm:$0xff]  ;;  %v49_v44 = vld [vmem:[%s683_s1 + $0x128] sm:$0xff]  ;;  %v48_v45 = vld [vmem:[%s683_s1 + $0x120] sm:$0xff] }
  0x10   :  { %361 = vmatpush3.msra.mxu0 %v20_v13  ;;  %394 = vmatpush3.msra.mxu1 %v37_v16  ;;  %v47_v46 = vld [vmem:[%s683_s1 + $0x118] sm:$0xff]  ;;  %v292_v47 = vld [vmem:[%s683_s1 + $0x180] ss:$0 sm:$0xff]  ;;  %v46_v52 = vld [vmem:[%s683_s1 + $0x110] sm:$0xff] }
  0x11   :  { %362 = vmatprep.subr.mxu0 %v453_v0  ;;  %395 = vmatprep.subr.mxu1 %v453_v0  ;;  %v45_v53 = vld [vmem:[%s683_s1 + $0x108] sm:$0xff]  ;;  %v44_v54 = vld [vmem:[%s683_s1 + $0x100] sm:$0xff] }
  0x12   :  { %363 = vmatpush3.msra.mxu0 %v19_v15  ;;  %396 = vmatpush3.msra.mxu1 %v36_v18  ;;  %v293_v55 = vld [vmem:[%s683_s1 + $0x181] ss:$0 sm:$0xff]  ;;  %v294_v60 = vld [vmem:[%s683_s1 + $0x182] ss:$0 sm:$0xff] }
  0x13   :  { %364 = vmatprep.subr.mxu0 %v453_v0  ;;  %397 = vmatprep.subr.mxu1 %v453_v0 }
  0x14   :  { %365 = vmatpush3.msra.mxu0 %v18_v17  ;;  %398 = vmatpush3.msra.mxu1 %v35_v20 }
  0x15   :  { %366 = vmatprep.subr.mxu0 %v453_v0  ;;  %399 = vmatprep.subr.mxu1 %v453_v0 }
  0x16   :  { %367 = vmatpush3.msra.mxu0 %v17_v19  ;;  %400 = vmatpush3.msra.mxu1 %v34_v22 }
  0x17   :  { %368 = vmatprep.subr.mxu0 %v453_v0  ;;  %401 = vmatprep.subr.mxu1 %v453_v0 }
  0x18   :  { %369 = vmatpush3.msra.mxu0 %v16_v21  ;;  %402 = vmatpush3.msra.mxu1 %v33_v24 }
  0x19   :  { %370 = vmatprep.subr.mxu0 %v453_v0  ;;  %403 = vmatprep.subr.mxu1 %v453_v0 }
  0x1a   :  { %371 = vmatpush3.msra.mxu0 %v15_v23  ;;  %404 = vmatpush3.msra.mxu1 %v32_v26 }
  0x1b   :  { %372 = vmatprep.subr.mxu0 %v453_v0  ;;  %405 = vmatprep.subr.mxu1 %v453_v0 }
  0x1c   :  { %373 = vmatpush3.msra.mxu0 %v14_v25  ;;  %406 = vmatpush3.msra.mxu1 %v31_v28 }
  0x1d   :  { %374 = vmatprep.subr.mxu0 %v453_v0  ;;  %407 = vmatprep.subr.mxu1 %v453_v0 }
  0x1e   :  { %375 = vmatpush3.msra.mxu0 %v13_v27  ;;  %408 = vmatpush3.msra.mxu1 %v30_v31 }
  0x1f   :  { %376 = vmatprep.subr.mxu0 %v453_v0  ;;  %409 = vmatprep.subr.mxu1 %v453_v0 }
  0x20   :  { %377 = vmatpush3.msra.mxu0 %v12_v29  ;;  %410 = vmatpush3.msra.mxu1 %v29_v32 }
  0x21   :  { %379 = vmatmul.mubr.f32.vlgmr.msra.gmra.mxu0 %v11_v30  ;;  %416 = vmatprep.subr.mxu0 %v453_v0 }
  0x22   :  { %448 = vmatprep.mubr.msk.f32.mxu0 %vm454_vm0, %v453_v0  ;;  %411 = vmatprep.subr.mxu1 %v453_v0 }
  0x23   :  { %412 = vmatpush3.msra.mxu1 %v28_v33  ;;  %417 = vmatpush3.msra.mxu0 %v59_v34 }
  0x24   :  { %418 = vmatprep.subr.mxu0 %v453_v0 }
  0x25   :  { %419 = vmatpush3.msra.mxu0 %v58_v35 }
  0x26   :  { %420 = vmatprep.subr.mxu0 %v453_v0 }
  0x27   :  { %421 = vmatpush3.msra.mxu0 %v57_v36 }
  0x28   :  { %422 = vmatprep.subr.mxu0 %v453_v0 }
  0x29   :  { %423 = vmatpush3.msra.mxu0 %v56_v37 }
  0x2a   :  { %424 = vmatprep.subr.mxu0 %v453_v0 }
  0x2b   :  { %425 = vmatpush3.msra.mxu0 %v55_v38 }
  0x2c   :  { %426 = vmatprep.subr.mxu0 %v453_v0 }
  0x2d   :  { %427 = vmatpush3.msra.mxu0 %v54_v39 }
  0x2e   :  { %428 = vmatprep.subr.mxu0 %v453_v0 }
  0x2f   :  { %429 = vmatpush3.msra.mxu0 %v53_v40 }
  0x30   :  { %430 = vmatprep.subr.mxu0 %v453_v0 }
  0x31   :  { %431 = vmatpush3.msra.mxu0 %v52_v41 }
  0x32   :  { %432 = vmatprep.subr.mxu0 %v453_v0 }
  0x33   :  { %433 = vmatpush3.msra.mxu0 %v51_v42 }
  0x34   :  { %434 = vmatprep.subr.mxu0 %v453_v0 }
  0x35   :  { %435 = vmatpush3.msra.mxu0 %v50_v43 }
  0x36   :  { %436 = vmatprep.subr.mxu0 %v453_v0 }
  0x37   :  { %437 = vmatpush3.msra.mxu0 %v49_v44 }
  0x38   :  { %438 = vmatprep.subr.mxu0 %v453_v0 }
  0x39   :  { %439 = vmatpush3.msra.mxu0 %v48_v45 }
  0x3a   :  { %440 = vmatprep.subr.mxu0 %v453_v0 }
  0x3b   :  { %441 = vmatpush3.msra.mxu0 %v47_v46 }
  0x3c   :  { %442 = vmatprep.subr.mxu0 %v453_v0 }
  0x3d   :  { %443 = vmatpush3.msra.mxu0 %v46_v52 }
  0x3e   :  { %444 = vmatprep.subr.mxu0 %v453_v0 }
  0x3f   :  { %445 = vmatpush3.msra.mxu0 %v45_v53 }
  0x40   :  { %446 = vmatprep.subr.mxu0 %v453_v0 }
  0x41   :  { %447 = vmatpush3.msra.mxu0 %v44_v54 }
  0xe1   :  { %v133_v48 = vpop.f32.mrf.mxu0 }
  0xe2   :  { %v134_v49 = vadd.f32 %v292_v47, %v133_v48 }
  0xe3   :  { %v380_v50 = vpop.f32.mrf.mxu0 }
  0xe4   :  { %v137_v51 = vmax.f32 %v134_v49, 0.0 }
  0xe6   :  { %414 = vmatmul.mubr.f32.vlgmr.msra.gmra.mxu1 %v137_v51 }
 0x1a6   :  { %v208_v56 = vpop.f32.mrf.mxu1 }
 0x1a7   :  { %v209_v57 = vadd.f32 %v293_v55, %v208_v56 }
 0x1a8   :  { %v415_v58 = vpop.f32.mrf.mxu1 }
 0x1a9   :  { %v212_v59 = vmax.f32 %v209_v57, 0.0 }
 0x1ab   :  { %449 = vmatmul.mubr.f32.vlgmr.msra.gmra.mxu0 %v212_v59 }
 0x26b   :  { %v283_v61 = vpop.f32.mrf.mxu0 }
 0x26c   :  { %v284_v62 = vadd.f32 %v294_v60, %v283_v61 }
 0x26d   :  { %v450_v63 = vpop.f32.mrf.mxu0 }
 0x26e   :  { %287 = vst [vmem:[%s685_s2] sm:$0xff] %v284_v62 }

</bundles_post_ra>
